<compile_context>
chip_gen: v7x
topology: tpu7x:2x2x1
jax: 0.10.0
libtpu: 0.0.40
codegen_flags: <defaults>
</compile_context>

<pallas_src>
import jax
import jax.numpy as jnp
from jax.experimental import pallas as pl
from jax.experimental.pallas import tpu as pltpu

ROWS, COLS = 8, 16


def _cumsum_rows_kernel(x_ref, upper_ref, o_ref):
    # out[i, j] = sum_{k <= j} x[i, k]  ==  x @ U,  U[k, j] = 1 if k <= j.
    # U is precomputed in the wrapper; one bf16 MXU dot, f32 accumulate.
    o_ref[...] = jnp.dot(
        x_ref[...], upper_ref[...], preferred_element_type=jnp.float32
    )


def pallas_cumsum_rows(x_bf16, upper_bf16):
    return pl.pallas_call(
        _cumsum_rows_kernel,
        out_shape=jax.ShapeDtypeStruct((ROWS, COLS), jnp.float32),
        in_specs=[
            pl.BlockSpec(memory_space=pltpu.VMEM),
            pl.BlockSpec(memory_space=pltpu.VMEM),
        ],
        out_specs=pl.BlockSpec(memory_space=pltpu.VMEM),
    )(x_bf16, upper_bf16)


def model_forward(x1):
    # x1 accepted for signature parity with the PyTorch module but unused,
    # exactly as in the reference forward().
    del x1
    # t1 = torch.full([8, 16], 1, dtype=complex128) -> real = 1, imag = 0
    # t2 = t1.to(complex32): values stay exact (small integers).
    re_plane = jnp.ones((ROWS, COLS), dtype=jnp.bfloat16)
    # Upper-triangular ones matrix, hoisted out of the kernel as a constant
    # operand (XLA folds it to a literal).
    k_idx = jax.lax.broadcasted_iota(jnp.int32, (COLS, COLS), 0)
    j_idx = jax.lax.broadcasted_iota(jnp.int32, (COLS, COLS), 1)
    upper = (k_idx <= j_idx).astype(jnp.bfloat16)
    # t3 = cumsum(t2, dim=1): only the real plane needs computing; the
    # imaginary plane is identically zero and cumsums to zero.
    out_re = pallas_cumsum_rows(re_plane, upper)
    out_im = jnp.zeros((ROWS, COLS), dtype=jnp.float32)
    # TODO(synk): torch.complex32 half-precision complex has no JAX/TPU dtype;
    #             nearest representable result (complex64) is produced instead.
    return jax.lax.complex(out_re, out_im)


if __name__ == "__main__":
    key = jax.random.PRNGKey(0)
    # Example input consistent with an arbitrary image-like tensor (unused).
    x1 = jax.random.normal(key, (2, 4, 16, 16), dtype=jnp.float32)

    out = model_forward(x1)
    out = jax.block_until_ready(out)

    # Reference semantics: each row is 1+0j, 2+0j, ..., 16+0j.
    expected = jnp.broadcast_to(
        jnp.arange(1, COLS + 1, dtype=jnp.float32), (ROWS, COLS)
    ).astype(jnp.complex64)
    assert out.shape == (ROWS, COLS)
    assert out.dtype == jnp.complex64
    assert jnp.allclose(out, expected)

    print("KERNEL_OK")
</pallas_src>

<mosaic_0001>
module attributes {stable_mosaic.version = 11 : i64} {
  func.func @_cumsum_rows_kernel(%arg0: memref<8x16xbf16, #tpu.memory_space<vmem>>, %arg1: memref<16x16xbf16, #tpu.memory_space<vmem>>, %arg2: memref<8x16xf32, #tpu.memory_space<vmem>>) attributes {dimension_semantics = [], scalar_prefetch = 0 : i64, scratch_operands = 0 : i64, tpu.core_type = #tpu.core_type<tc>} {
    %c0 = arith.constant 0 : index
    %c0_0 = arith.constant 0 : index
    %0 = vector.load %arg0[%c0, %c0_0] : memref<8x16xbf16, #tpu.memory_space<vmem>>, vector<8x16xbf16>
    %c0_1 = arith.constant 0 : index
    %c0_2 = arith.constant 0 : index
    %1 = vector.load %arg1[%c0_1, %c0_2] : memref<16x16xbf16, #tpu.memory_space<vmem>>, vector<16x16xbf16>
    %cst = arith.constant dense<0.000000e+00> : vector<8x16xf32>
    %2 = tpu.matmul %0, %1, %cst {dimension_numbers = #tpu.dot_dimension_numbers<[1], [0], [0], [1], [0, 0, 1, 1], [], []>} : vector<8x16xbf16>, vector<16x16xbf16>, vector<8x16xf32> -> vector<8x16xf32>
    %c0_3 = arith.constant 0 : index
    %c0_4 = arith.constant 0 : index
    %3 = vector.load %arg2[%c0_3, %c0_4] : memref<8x16xf32, #tpu.memory_space<vmem>>, vector<8x16xf32>
    tpu.vector_store %arg2[%c0_3, %c0_4], %2 {strides = array<i32>} : memref<8x16xf32, #tpu.memory_space<vmem>>, vector<8x16xf32>,
    return
  }
}

</mosaic_0001>

<bundles_post_ra>
// kernel: tpu_custom_call.1
= control target key start
LH: loop header
LB: loop body
LE: loop exit
PB: predicated region body
PF: predicated region fallthrough
CT: control target
= control target key end

     0   :  { %7 = vsyncpa [#allocation3], 0  ;;  %s264_s0 = inlined_call_operand.hbm [shape: bf16[8,16], index: 0, kind: input, shape index: {}]   ;;  %s265_s1 = inlined_call_operand.hbm [shape: bf16[16,16], index: 1, kind: input, shape index: {}]   ;;  %s266_s2 = inlined_call_operand.hbm [shape: f32[8,16], index: 2, kind: output, shape index: {}]  }
   0x1   :  { %8 = vsyncpa [#allocation6], 0 }
   0x2   :  { %9 = vsyncpa [#allocation4], 0  ;;  %s199_s9 = smov [#allocation2]   ;;  %s200_s11 = smov [#allocation5]  }
   0x3   :  { %s16_s10 = sshll.u32 %s199_s9, 4  ;;  %s25_s12 = sshll.u32 %s200_s11, 4  ;;  %s17_s10 = int_to_ptr.vmem [resolvable:$true] %s16_s10  ;;  %s221_s12 = int_to_ptr.vmem [resolvable:$true] %s25_s12 }
   0x4   :  { %s127_s15 = scalar_lea.hbm %s264_s0, 64 }
   0x5   :  { %p128_p0 = scmp.ne.s32.totalorder %s264_s0, %s127_s15  ;;  %p131_p1 = scmp.lt.u32.totalorder %s127_s15, %s264_s0 }
   0x7   :  { %p133_p2 = pnand %p131_p1, %p128_p0 }
   0x9   :  { %136 = shalt.err (!%p133_p2)
}
   0xa   :  { %s137_s20 = scalar_lea.vmem %s17_s10, 64  ;;  %p142_p4 = scmp.lt.s32.totalorder %s17_s10, %s17_s10 }
   0xb   :  { %p138_p3 = scmp.ne.s32.totalorder %s17_s10, %s137_s20  ;;  %p143_p5 = scmp.lt.s32.totalorder %s137_s20, %s137_s20 }
   0xd   :  { %p144_p6 = por %p143_p5, %p142_p4 }
   0xf   :  { %p145_p7 = pnand %p144_p6, %p138_p3 }
  0x11   :  { %148 = shalt.err (!%p145_p7)
}
  0x12   :  { %19 = dma.hbm_to_vmem [thread:$0]  %s264_s0, 64, %s17_s10, [#allocation3]  }
  0x13   :  { %s149_s25 = scalar_lea.hbm %s265_s1, 128 }
  0x14   :  { %p150_p8 = scmp.ne.s32.totalorder %s265_s1, %s149_s25  ;;  %p153_p9 = scmp.lt.u32.totalorder %s149_s25, %s265_s1 }
  0x16   :  { %p155_p10 = pnand %p153_p9, %p150_p8 }
  0x18   :  { %158 = shalt.err (!%p155_p10)
}
  0x19   :  { %s159_s30 = scalar_lea.vmem %s221_s12, 128  ;;  %p164_p12 = scmp.lt.s32.totalorder %s221_s12, %s221_s12 }
  0x1a   :  { %p160_p11 = scmp.ne.s32.totalorder %s221_s12, %s159_s30  ;;  %p165_p13 = scmp.lt.s32.totalorder %s159_s30, %s159_s30 }
  0x1c   :  { %p166_p0 = por %p165_p13, %p164_p12 }
  0x1e   :  { %p167_p1 = pnand %p166_p0, %p160_p11 }
  0x20   :  { %170 = shalt.err (!%p167_p1)
}
  0x21   :  { %s201_s0 = smov 64   ;;  %s202_s3 = smov 4  }
  0x22   :  { %31 = dma.hbm_to_vmem [thread:$0]  %s265_s1, 128, %s221_s12, [#allocation6], %s201_s0, %s201_s0, %s202_s3  }
  0x23   :  { %193 = dma.done.wait [#allocation3], 64  }
  0x24   :  { %194 = vsyncadd [#allocation3], 4294967232 }
  0x25   :  { %195 = dma.done.wait [#allocation6], 128  }
  0x26   :  { %196 = vsyncadd [#allocation6], 4294967168  ;;  %v203_v0 = vmov 0.0   ;;  %vm204_vm0 = vmmov 0   ;;  %v126_v1 = vld [vmem:[#allocation5] sm:$0xff]   ;;  %vm48_vm1 = vcmask 130048  }
  0x27   :  { %113 = vmatprep.subr.bf16.mxu0 %v203_v0  ;;  %115 = vmatprep.mubr.msk.bf16.mxu0 %vm204_vm0, %v203_v0  ;;  %v39_v2 = vld [vmem:[#allocation2] sm:$0xf]  ;;  %s205_s6 = smov [#allocation7]  }
  0x28   :  { %114 = vmatpush3.bf16.msra.mxu0 %v126_v1  ;;  %s99_s7 = sshll.u32 %s205_s6, 4  ;;  %s100_s7 = int_to_ptr.vmem [resolvable:$true] %s99_s7 }
  0x29   :  { %s171_s1 = scalar_lea.vmem %s100_s7, 128  ;;  %p176_p3 = scmp.lt.s32.totalorder %s100_s7, %s100_s7 }
  0x2a   :  { %p172_p2 = scmp.ne.s32.totalorder %s100_s7, %s171_s1  ;;  %p177_p4 = scmp.lt.s32.totalorder %s171_s1, %s171_s1 }
  0x2b   :  { %116 = vmatmul.mubr.msk.bf16.vlgmr.msra.gmra.mrb[0].mxu0 %vm48_vm1, %v39_v2 }
  0x2c   :  { %p178_p5 = por %p177_p4, %p176_p3 }
  0x2e   :  { %p179_p6 = pnand %p178_p5, %p172_p2 }
  0xfe   :  { %v86_v3 = vpop.f32.mrb[0].mxu0 }
  0xff   :  { %92 = vst.msk [vmem:[#allocation7] sm:$0xff] %vm48_vm1, %v86_v3  ;;  %v117_v4 = vpop.f32.mrb[1].mxu0 }
 0x100   :  { %v89_v5 = vpop.f32.mrb[2].mxu0 }
 0x101   :  { %182 = shalt.err (!%p179_p6)
}
 0x102   :  { %s183_s10 = scalar_lea.hbm %s266_s2, 128 }
 0x103   :  { %p184_p7 = scmp.ne.s32.totalorder %s266_s2, %s183_s10  ;;  %p187_p8 = scmp.lt.u32.totalorder %s183_s10, %s266_s2 }
 0x105   :  { %p189_p9 = pnand %p187_p8, %p184_p7 }
 0x107   :  { %192 = shalt.err (!%p189_p9)
}
 0x108   :  { %102 = dma.vmem_to_hbm [thread:$0]  %s100_s7, 128, %s266_s2, [#allocation4]   ;;  %v118_v6 = vpop.f32.mrb[3].mxu0 }
 0x109   :  { %197 = dma.done.wait [#allocation4], 128  }
 0x10a   :  { %198 = vsyncadd [#allocation4], 4294967168 }
 0x10b   :  { %106 = vsyncpa [#allocation3], 1 }
 0x10c   :  { %107 = vsyncpa [#allocation6], 1 }
 0x10d   :  { %108 = vsyncpa [#allocation4], 1 }

</bundles_post_ra>
